<compile_context>
chip_gen: v7x
topology: tpu7x:2x2x1
jax: 0.10.0
libtpu: 0.0.40
codegen_flags: <defaults>
</compile_context>

<pallas_src>
import functools
import math

import jax
import jax.numpy as jnp
from jax.experimental import pallas as pl
from jax.experimental.pallas import tpu as pltpu

LOG_2PI = math.log(2.0 * math.pi)
OUT_PAD = 128  # lane-dense slab width; must be >= action_dim + 3


def _round_up(n, m):
    return ((n + m - 1) // m) * m


def _actor_critic_kernel(action_dim,
                         c_ref, x_ref, eps_ref, a_ref,
                         w1_ref, b1_ref, w2_ref, b2_ref, w3_ref, b3_ref,
                         dist_ref, o_ref):
    x = x_ref[...]

    # Fused policy+value MLP (3 wide matmuls instead of 6 skinny ones).
    h = jnp.tanh(jnp.dot(x, w1_ref[...], preferred_element_type=jnp.float32)
                 + b1_ref[...])
    h = jnp.tanh(jnp.dot(h, w2_ref[...], preferred_element_type=jnp.float32)
                 + b2_ref[...])
    head = (jnp.dot(h, w3_ref[...], preferred_element_type=jnp.float32)
            + b3_ref[...])
    # head lanes: [0, A) = mu, lane A = v, remaining lanes = 0.

    std = dist_ref[0:1, :]      # (1, OUT_PAD): exp(log_std) on action lanes, 0 elsewhere
    inv_var = dist_ref[1:2, :]  # (1, OUT_PAD): exp(-2*log_std) on action lanes, 0 elsewhere
    c = c_ref[0]                # -sum(log_std) - 0.5*A*log(2*pi)

    noise = std * eps_ref[...]  # = pi - mu on action lanes, 0 elsewhere
    slab = head + noise         # pi on lanes [0, A); v rides along on lane A

    # Normal log-prob sums (masked lanes contribute 0 via inv_var == 0).
    d_a = a_ref[...] - head
    logp = -0.5 * jnp.sum(d_a * d_a * inv_var, axis=-1, keepdims=True) + c
    logp_pi = -0.5 * jnp.sum(noise * noise * inv_var, axis=-1, keepdims=True) + c

    # Pack logp / logp_pi into the lane-dense slab (single unmasked store).
    lane = jax.lax.broadcasted_iota(jnp.int32, slab.shape, 1)
    slab = jnp.where(lane == action_dim + 1, logp, slab)
    slab = jnp.where(lane == action_dim + 2, logp_pi, slab)
    o_ref[...] = slab


def pack_params(params):
    """Fuse policy/value weights and precompute distribution constants."""
    pw1, pb1 = params["pw1"], params["pb1"]
    pw2, pb2 = params["pw2"], params["pb2"]
    pw3, pb3 = params["pw3"], params["pb3"]
    vw1, vb1 = params["vw1"], params["vb1"]
    vw2, vb2 = params["vw2"], params["vb2"]
    vw3, vb3 = params["vw3"], params["vb3"]
    log_std = params["log_std"]                  # (1, A)

    hidden = pw2.shape[0]
    action_dim = pw3.shape[1]
    assert action_dim + 3 <= OUT_PAD, "OUT_PAD too small for action_dim"
    f32 = jnp.float32

    w1 = jnp.concatenate([pw1, vw1], axis=1).astype(f32)          # (IN, 2H)
    b1 = jnp.concatenate([pb1, vb1], axis=1).astype(f32)          # (1, 2H)
    zero_h = jnp.zeros((hidden, hidden), f32)
    w2 = jnp.block([[pw2, zero_h], [zero_h, vw2]]).astype(f32)    # (2H, 2H)
    b2 = jnp.concatenate([pb2, vb2], axis=1).astype(f32)          # (1, 2H)

    w3 = jnp.zeros((2 * hidden, OUT_PAD), f32)
    w3 = w3.at[:hidden, :action_dim].set(pw3)
    w3 = w3.at[hidden:, action_dim:action_dim + 1].set(vw3)
    b3 = jnp.zeros((1, OUT_PAD), f32)
    b3 = b3.at[:, :action_dim].set(pb3)
    b3 = b3.at[:, action_dim:action_dim + 1].set(vb3)

    std = jnp.zeros((1, OUT_PAD), f32).at[:, :action_dim].set(jnp.exp(log_std))
    inv_var = jnp.zeros((1, OUT_PAD), f32).at[:, :action_dim].set(
        jnp.exp(-2.0 * log_std))
    dist = jnp.concatenate([std, inv_var], axis=0)                # (2, OUT_PAD)
    c = jnp.reshape(-jnp.sum(log_std) - 0.5 * action_dim * LOG_2PI, (1,)).astype(f32)

    return dict(w1=w1, b1=b1, w2=w2, b2=b2, w3=w3, b3=b3,
                dist=dist, c=c, action_dim=action_dim)


def actor_critic_forward(x, a, eps, packed, *, block_b=512):
    """Returns (pi, logp, logp_pi, v) matching the PyTorch module semantics."""
    B, in_features = x.shape
    A = packed["action_dim"]
    h2 = packed["w1"].shape[1]

    # Batch tile: multiple of 8 sublanes, big by default (streams under the grid).
    tb = _round_up(min(block_b, _round_up(B, 8)), 8)
    b_pad = _round_up(B, tb)

    f32 = jnp.float32
    x_p = jnp.zeros((b_pad, in_features), f32).at[:B].set(x.astype(f32))
    eps_p = jnp.zeros((b_pad, OUT_PAD), f32).at[:B, :A].set(eps.astype(f32))
    a_p = jnp.zeros((b_pad, OUT_PAD), f32).at[:B, :A].set(a.astype(f32))

    grid = (pl.cdiv(b_pad, tb),)

    def batch_spec(lanes):
        return pl.BlockSpec((tb, lanes), lambda i: (i, 0))

    def const_spec(shape):
        return pl.BlockSpec(shape, lambda i: (0, 0))   # VMEM-resident across grid

    out = pl.pallas_call(
        functools.partial(_actor_critic_kernel, A),
        out_shape=jax.ShapeDtypeStruct((b_pad, OUT_PAD), f32),
        grid=grid,
        in_specs=[
            pl.BlockSpec(memory_space=pltpu.MemorySpace.SMEM),   # c (scalar)
            batch_spec(in_features),                             # x
            batch_spec(OUT_PAD),                                 # eps (padded)
            batch_spec(OUT_PAD),                                 # a   (padded)
            const_spec((in_features, h2)),                       # w1
            const_spec((1, h2)),                                 # b1
            const_spec((h2, h2)),                                # w2
            const_spec((1, h2)),                                 # b2
            const_spec((h2, OUT_PAD)),                           # w3
            const_spec((1, OUT_PAD)),                            # b3
            const_spec((2, OUT_PAD)),                            # dist (std, inv_var)
        ],
        out_specs=batch_spec(OUT_PAD),
        compiler_params=pltpu.CompilerParams(
            dimension_semantics=("parallel",)),
    )(packed["c"], x_p, eps_p, a_p,
      packed["w1"], packed["b1"], packed["w2"], packed["b2"],
      packed["w3"], packed["b3"], packed["dist"])

    pi = out[:B, :A]
    v = out[:B, A]
    logp = out[:B, A + 1]
    logp_pi = out[:B, A + 2]
    return pi, logp, logp_pi, v


def init_params(key, in_features, hidden_sizes, action_dim):
    """PyTorch-default-like init: W ~ U(-1/sqrt(fan_in), 1/sqrt(fan_in)),
    biases zeroed (module zeros them explicitly), log_std = -0.5."""
    sizes_pi = [in_features] + list(hidden_sizes) + [action_dim]
    sizes_v = [in_features] + list(hidden_sizes) + [1]

    def linear(k, fan_in, fan_out):
        bound = 1.0 / math.sqrt(fan_in)
        w = jax.random.uniform(k, (fan_in, fan_out), jnp.float32, -bound, bound)
        b = jnp.zeros((1, fan_out), jnp.float32)
        return w, b

    keys = jax.random.split(key, 6)
    params = {}
    for i, name in enumerate(["pw1", "pw2", "pw3"]):
        w, b = linear(keys[i], sizes_pi[i], sizes_pi[i + 1])
        params[name] = w
        params["pb" + name[-1]] = b
    for i, name in enumerate(["vw1", "vw2", "vw3"]):
        w, b = linear(keys[3 + i], sizes_v[i], sizes_v[i + 1])
        params[name] = w
        params["vb" + name[-1]] = b
    params["log_std"] = -0.5 * jnp.ones((1, action_dim), jnp.float32)
    return params


if __name__ == "__main__":
    B = 8            # batch
    IN = 16          # observation features
    HIDDEN = (32, 32)
    ACT = 4          # Box action dim

    root = jax.random.PRNGKey(0)
    k_x, k_a, k_eps, k_params = jax.random.split(root, 4)

    x = jax.random.normal(k_x, (B, IN), jnp.float32)
    a = jax.random.normal(k_a, (B, ACT), jnp.float32)
    eps = jax.random.normal(k_eps, (B, ACT), jnp.float32)  # Normal.sample() noise
    params = init_params(k_params, IN, HIDDEN, ACT)
    packed = pack_params(params)

    pi, logp, logp_pi, v = actor_critic_forward(x, a, eps, packed)
    jax.block_until_ready((pi, logp, logp_pi, v))

    # ---- pure-JAX reference check ----
    def mlp(inp, ws, bs):
        h = inp
        for w, b in zip(ws[:-1], bs[:-1]):
            h = jnp.tanh(h @ w + b)
        return h @ ws[-1] + bs[-1]

    mu_ref = mlp(x, [params["pw1"], params["pw2"], params["pw3"]],
                 [params["pb1"], params["pb2"], params["pb3"]])
    std_ref = jnp.exp(params["log_std"])
    pi_ref = mu_ref + std_ref * eps

    def lp(val):
        return jnp.sum(-0.5 * ((val - mu_ref) / std_ref) ** 2
                       - params["log_std"] - 0.5 * LOG_2PI, axis=-1)

    v_ref = mlp(x, [params["vw1"], params["vw2"], params["vw3"]],
                [params["vb1"], params["vb2"], params["vb3"]])[:, 0]

    assert jnp.allclose(pi, pi_ref, atol=1e-4, rtol=1e-4), "pi mismatch"
    assert jnp.allclose(logp, lp(a), atol=1e-4, rtol=1e-4), "logp mismatch"
    assert jnp.allclose(logp_pi, lp(pi_ref), atol=1e-4, rtol=1e-4), "logp_pi mismatch"
    assert jnp.allclose(v, v_ref, atol=1e-4, rtol=1e-4), "v mismatch"

    print("KERNEL_OK")
</pallas_src>

<mosaic_0001>
module attributes {stable_mosaic.version = 11 : i64} {
  func.func @_actor_critic_kernel(%arg0: i32, %arg1: memref<1xf32, #tpu.memory_space<smem>>, %arg2: memref<8x16xf32, #tpu.memory_space<vmem>>, %arg3: memref<8x128xf32, #tpu.memory_space<vmem>>, %arg4: memref<8x128xf32, #tpu.memory_space<vmem>>, %arg5: memref<16x64xf32, #tpu.memory_space<vmem>>, %arg6: memref<1x64xf32, #tpu.memory_space<vmem>>, %arg7: memref<64x64xf32, #tpu.memory_space<vmem>>, %arg8: memref<1x64xf32, #tpu.memory_space<vmem>>, %arg9: memref<64x128xf32, #tpu.memory_space<vmem>>, %arg10: memref<1x128xf32, #tpu.memory_space<vmem>>, %arg11: memref<2x128xf32, #tpu.memory_space<vmem>>, %arg12: memref<8x128xf32, #tpu.memory_space<vmem>>) attributes {dimension_semantics = [#tpu.dimension_semantics<parallel>], iteration_bounds = array<i64: 1>, scalar_prefetch = 0 : i64, scratch_operands = 0 : i64, tpu.core_type = #tpu.core_type<tc>, window_params = [{transform_indices = @transform_0, window_bounds = array<i64: 1>}, {transform_indices = @transform_1, window_bounds = array<i64: 8, 16>}, {transform_indices = @transform_2, window_bounds = array<i64: 8, 128>}, {transform_indices = @transform_3, window_bounds = array<i64: 8, 128>}, {pipeline_mode = #tpu.pipeline_mode<synchronous>, transform_indices = @transform_4, window_bounds = array<i64: 16, 64>}, {pipeline_mode = #tpu.pipeline_mode<synchronous>, transform_indices = @transform_5, window_bounds = array<i64: 1, 64>}, {pipeline_mode = #tpu.pipeline_mode<synchronous>, transform_indices = @transform_6, window_bounds = array<i64: 64, 64>}, {pipeline_mode = #tpu.pipeline_mode<synchronous>, transform_indices = @transform_7, window_bounds = array<i64: 1, 64>}, {pipeline_mode = #tpu.pipeline_mode<synchronous>, transform_indices = @transform_8, window_bounds = array<i64: 64, 128>}, {pipeline_mode = #tpu.pipeline_mode<synchronous>, transform_indices = @transform_9, window_bounds = array<i64: 1, 128>}, {pipeline_mode = #tpu.pipeline_mode<synchronous>, transform_indices = @transform_10, window_bounds = array<i64: 2, 128>}, {transform_indices = @transform_11, window_bounds = array<i64: 8, 128>}]} {
    %c0 = arith.constant 0 : index
    %c0_0 = arith.constant 0 : index
    %0 = vector.load %arg2[%c0, %c0_0] : memref<8x16xf32, #tpu.memory_space<vmem>>, vector<8x16xf32>
    %c0_1 = arith.constant 0 : index
    %c0_2 = arith.constant 0 : index
    %1 = vector.load %arg5[%c0_1, %c0_2] : memref<16x64xf32, #tpu.memory_space<vmem>>, vector<16x64xf32>
    %cst = arith.constant dense<0.000000e+00> : vector<8x64xf32>
    %2 = tpu.matmul %0, %1, %cst {dimension_numbers = #tpu.dot_dimension_numbers<[1], [0], [0], [1], [0, 0, 1, 1], [], []>} : vector<8x16xf32>, vector<16x64xf32>, vector<8x64xf32> -> vector<8x64xf32>
    %c0_3 = arith.constant 0 : index
    %c0_4 = arith.constant 0 : index
    %3 = vector.load %arg6[%c0_3, %c0_4] : memref<1x64xf32, #tpu.memory_space<vmem>>, vector<1x64xf32>
    %4 = vector.broadcast %3 : vector<1x64xf32> to vector<8x64xf32>
    %5 = arith.addf %2, %4 : vector<8x64xf32>
    %6 = math.tanh %5 : vector<8x64xf32>
    %c0_5 = arith.constant 0 : index
    %c0_6 = arith.constant 0 : index
    %7 = vector.load %arg7[%c0_5, %c0_6] : memref<64x64xf32, #tpu.memory_space<vmem>>, vector<64x64xf32>
    %cst_7 = arith.constant dense<0.000000e+00> : vector<8x64xf32>
    %8 = tpu.matmul %6, %7, %cst_7 {dimension_numbers = #tpu.dot_dimension_numbers<[1], [0], [0], [1], [0, 0, 1, 1], [], []>} : vector<8x64xf32>, vector<64x64xf32>, vector<8x64xf32> -> vector<8x64xf32>
    %c0_8 = arith.constant 0 : index
    %c0_9 = arith.constant 0 : index
    %9 = vector.load %arg8[%c0_8, %c0_9] : memref<1x64xf32, #tpu.memory_space<vmem>>, vector<1x64xf32>
    %10 = vector.broadcast %9 : vector<1x64xf32> to vector<8x64xf32>
    %11 = arith.addf %8, %10 : vector<8x64xf32>
    %12 = math.tanh %11 : vector<8x64xf32>
    %c0_10 = arith.constant 0 : index
    %c0_11 = arith.constant 0 : index
    %13 = vector.load %arg9[%c0_10, %c0_11] : memref<64x128xf32, #tpu.memory_space<vmem>>, vector<64x128xf32>
    %cst_12 = arith.constant dense<0.000000e+00> : vector<8x128xf32>
    %14 = tpu.matmul %12, %13, %cst_12 {dimension_numbers = #tpu.dot_dimension_numbers<[1], [0], [0], [1], [0, 0, 1, 1], [], []>} : vector<8x64xf32>, vector<64x128xf32>, vector<8x128xf32> -> vector<8x128xf32>
    %c0_13 = arith.constant 0 : index
    %c0_14 = arith.constant 0 : index
    %15 = vector.load %arg10[%c0_13, %c0_14] : memref<1x128xf32, #tpu.memory_space<vmem>>, vector<1x128xf32>
    %16 = vector.broadcast %15 : vector<1x128xf32> to vector<8x128xf32>
    %17 = arith.addf %14, %16 : vector<8x128xf32>
    %c0_15 = arith.constant 0 : index
    %c0_16 = arith.constant 0 : index
    %18 = vector.load %arg11[%c0_15, %c0_16] : memref<2x128xf32, #tpu.memory_space<vmem>>, vector<1x128xf32>
    %c1 = arith.constant 1 : index
    %c0_17 = arith.constant 0 : index
    %19 = vector.load %arg11[%c1, %c0_17] : memref<2x128xf32, #tpu.memory_space<vmem>>, vector<1x128xf32>
    %c0_18 = arith.constant 0 : index
    %20 = memref.load %arg1[%c0_18] : memref<1xf32, #tpu.memory_space<smem>>
    %c0_19 = arith.constant 0 : index
    %c0_20 = arith.constant 0 : index
    %21 = vector.load %arg3[%c0_19, %c0_20] : memref<8x128xf32, #tpu.memory_space<vmem>>, vector<8x128xf32>
    %22 = vector.broadcast %18 : vector<1x128xf32> to vector<8x128xf32>
    %23 = arith.mulf %22, %21 : vector<8x128xf32>
    %24 = arith.addf %17, %23 : vector<8x128xf32>
    %c0_21 = arith.constant 0 : index
    %c0_22 = arith.constant 0 : index
    %25 = vector.load %arg4[%c0_21, %c0_22] : memref<8x128xf32, #tpu.memory_space<vmem>>, vector<8x128xf32>
    %26 = arith.subf %25, %17 : vector<8x128xf32>
    %27 = arith.mulf %26, %26 : vector<8x128xf32>
    %28 = vector.broadcast %19 : vector<1x128xf32> to vector<8x128xf32>
    %29 = arith.mulf %27, %28 : vector<8x128xf32>
    %cst_23 = arith.constant dense<0.000000e+00> : vector<8xf32>
    %30 = vector.multi_reduction <add>, %29, %cst_23 [1] : vector<8x128xf32> to vector<8xf32>
    %31 = vector.shape_cast %30 : vector<8xf32> to vector<8x1xf32>
    %cst_24 = arith.constant -5.000000e-01 : f32
    %32 = vector.broadcast %cst_24 : f32 to vector<8x1xf32>
    %33 = arith.mulf %32, %31 : vector<8x1xf32>
    %34 = vector.broadcast %20 : f32 to vector<8x1xf32>
    %35 = arith.addf %33, %34 : vector<8x1xf32>
    %36 = arith.mulf %23, %23 : vector<8x128xf32>
    %37 = vector.broadcast %19 : vector<1x128xf32> to vector<8x128xf32>
    %38 = arith.mulf %36, %37 : vector<8x128xf32>
    %cst_25 = arith.constant dense<0.000000e+00> : vector<8xf32>
    %39 = vector.multi_reduction <add>, %38, %cst_25 [1] : vector<8x128xf32> to vector<8xf32>
    %40 = vector.shape_cast %39 : vector<8xf32> to vector<8x1xf32>
    %cst_26 = arith.constant -5.000000e-01 : f32
    %41 = vector.broadcast %cst_26 : f32 to vector<8x1xf32>
    %42 = arith.mulf %41, %40 : vector<8x1xf32>
    %43 = vector.broadcast %20 : f32 to vector<8x1xf32>
    %44 = arith.addf %42, %43 : vector<8x1xf32>
    %45 = tpu.iota {dimensions = array<i32: 1>} : vector<8x128xi32>
    %c5_i32 = arith.constant 5 : i32
    %46 = vector.broadcast %c5_i32 : i32 to vector<8x128xi32>
    %47 = arith.cmpi eq, %45, %46 : vector<8x128xi32>
    %48 = vector.shape_cast %35 : vector<8x1xf32> to vector<8x1xf32>
    %49 = vector.broadcast %48 : vector<8x1xf32> to vector<8x128xf32>
    %50 = arith.select %47, %49, %24 : vector<8x128xi1>, vector<8x128xf32>
    %c6_i32 = arith.constant 6 : i32
    %51 = vector.broadcast %c6_i32 : i32 to vector<8x128xi32>
    %52 = arith.cmpi eq, %45, %51 : vector<8x128xi32>
    %53 = vector.shape_cast %44 : vector<8x1xf32> to vector<8x1xf32>
    %54 = vector.broadcast %53 : vector<8x1xf32> to vector<8x128xf32>
    %55 = arith.select %52, %54, %50 : vector<8x128xi1>, vector<8x128xf32>
    %c0_27 = arith.constant 0 : index
    %c0_28 = arith.constant 0 : index
    %56 = vector.load %arg12[%c0_27, %c0_28] : memref<8x128xf32, #tpu.memory_space<vmem>>, vector<8x128xf32>
    tpu.vector_store %arg12[%c0_27, %c0_28], %55 {strides = array<i32>} : memref<8x128xf32, #tpu.memory_space<vmem>>, vector<8x128xf32>,
    return
  }
  func.func @transform_0(%arg0: i32) -> i32 {
    %c0_i32 = arith.constant 0 : i32
    %c0_i32_0 = arith.constant 0 : i32
    return %c0_i32 : i32
  }
  func.func @transform_1(%arg0: i32) -> (i32, i32) {
    %c0_i32 = arith.constant 0 : i32
    %c0_i32_0 = arith.constant 0 : i32
    return %arg0, %c0_i32 : i32, i32
  }
  func.func @transform_2(%arg0: i32) -> (i32, i32) {
    %c0_i32 = arith.constant 0 : i32
    %c0_i32_0 = arith.constant 0 : i32
    return %arg0, %c0_i32 : i32, i32
  }
  func.func @transform_3(%arg0: i32) -> (i32, i32) {
    %c0_i32 = arith.constant 0 : i32
    %c0_i32_0 = arith.constant 0 : i32
    return %arg0, %c0_i32 : i32, i32
  }
  func.func @transform_4(%arg0: i32) -> (i32, i32) {
    %c0_i32 = arith.constant 0 : i32
    %c0_i32_0 = arith.constant 0 : i32
    %c0_i32_1 = arith.constant 0 : i32
    return %c0_i32, %c0_i32_0 : i32, i32
  }
  func.func @transform_5(%arg0: i32) -> (i32, i32) {
    %c0_i32 = arith.constant 0 : i32
    %c0_i32_0 = arith.constant 0 : i32
    %c0_i32_1 = arith.constant 0 : i32
    return %c0_i32, %c0_i32_0 : i32, i32
  }
  func.func @transform_6(%arg0: i32) -> (i32, i32) {
    %c0_i32 = arith.constant 0 : i32
    %c0_i32_0 = arith.constant 0 : i32
    %c0_i32_1 = arith.constant 0 : i32
    return %c0_i32, %c0_i32_0 : i32, i32
  }
  func.func @transform_7(%arg0: i32) -> (i32, i32) {
    %c0_i32 = arith.constant 0 : i32
    %c0_i32_0 = arith.constant 0 : i32
    %c0_i32_1 = arith.constant 0 : i32
    return %c0_i32, %c0_i32_0 : i32, i32
  }
  func.func @transform_8(%arg0: i32) -> (i32, i32) {
    %c0_i32 = arith.constant 0 : i32
    %c0_i32_0 = arith.constant 0 : i32
    %c0_i32_1 = arith.constant 0 : i32
    return %c0_i32, %c0_i32_0 : i32, i32
  }
  func.func @transform_9(%arg0: i32) -> (i32, i32) {
    %c0_i32 = arith.constant 0 : i32
    %c0_i32_0 = arith.constant 0 : i32
    %c0_i32_1 = arith.constant 0 : i32
    return %c0_i32, %c0_i32_0 : i32, i32
  }
  func.func @transform_10(%arg0: i32) -> (i32, i32) {
    %c0_i32 = arith.constant 0 : i32
    %c0_i32_0 = arith.constant 0 : i32
    %c0_i32_1 = arith.constant 0 : i32
    return %c0_i32, %c0_i32_0 : i32, i32
  }
  func.func @transform_11(%arg0: i32) -> (i32, i32) {
    %c0_i32 = arith.constant 0 : i32
    %c0_i32_0 = arith.constant 0 : i32
    return %arg0, %c0_i32 : i32, i32
  }
}

</mosaic_0001>

<bundles_post_ra>
// kernel: tpu_custom_call.1
= control target key start
LH: loop header
LB: loop body
LE: loop exit
PB: predicated region body
PF: predicated region fallthrough
CT: control target
= control target key end

     0   :  { %17 = vsyncpa [#allocation4], 0  ;;  %s854_s0 = inlined_call_operand.<no memory space> [shape: f32[1], index: 0, kind: input, shape index: {}]   ;;  %s855_s1 = inlined_call_operand.hbm [shape: f32[8,16], index: 1, kind: input, shape index: {}]   ;;  %s856_s2 = inlined_call_operand.hbm [shape: f32[8,128], index: 2, kind: input, shape index: {}]   ;;  %s857_s3 = inlined_call_operand.vmem [shape: f32[8,128], index: 3, kind: input, shape index: {}]   ;;  %s858_s4 = inlined_call_operand.hbm [shape: f32[16,64], index: 4, kind: input, shape index: {}]   ;;  %s859_s5 = inlined_call_operand.vmem [shape: f32[1,64], index: 5, kind: input, shape index: {}]   ;;  %s860_s6 = inlined_call_operand.hbm [shape: f32[64,64], index: 6, kind: input, shape index: {}]   ;;  %s861_s7 = inlined_call_operand.vmem [shape: f32[1,64], index: 7, kind: input, shape index: {}]   ;;  %s862_s8 = inlined_call_operand.hbm [shape: f32[64,128], index: 8, kind: input, shape index: {}]   ;;  %s863_s9 = inlined_call_operand.vmem [shape: f32[1,128], index: 9, kind: input, shape index: {}]   ;;  %s864_s10 = inlined_call_operand.vmem [shape: f32[2,128], index: 10, kind: input, shape index: {}]   ;;  %s865_s11 = inlined_call_operand.hbm [shape: f32[8,128], index: 11, kind: output, shape index: {}]  }
   0x1   :  { %18 = vsyncpa [#allocation7], 0 }
   0x2   :  { %19 = vsyncpa [#allocation10], 0 }
   0x3   :  { %20 = vsyncpa [#allocation5], 0  ;;  %s676_s17 = smov [#allocation6]   ;;  %s536_s21 = scalar_lea.hbm %s856_s2, 128 }
   0x4   :  { %s39_s18 = sshll.u32 %s676_s17, 4  ;;  %p537_p0 = scmp.ne.s32.totalorder %s856_s2, %s536_s21  ;;  %s40_s18 = int_to_ptr.vmem [resolvable:$true] %s39_s18 }
   0x5   :  { %p540_p1 = scmp.lt.u32.totalorder %s536_s21, %s856_s2 }
   0x7   :  { %p542_p2 = pnand %p540_p1, %p537_p0 }
   0x9   :  { %545 = shalt.err (!%p542_p2)
}
   0xa   :  { %s546_s26 = scalar_lea.vmem %s40_s18, 128  ;;  %p551_p4 = scmp.lt.s32.totalorder %s40_s18, %s40_s18 }
   0xb   :  { %p547_p3 = scmp.ne.s32.totalorder %s40_s18, %s546_s26  ;;  %p552_p5 = scmp.lt.s32.totalorder %s546_s26, %s546_s26 }
   0xd   :  { %p553_p6 = por %p552_p5, %p551_p4 }
   0xf   :  { %p554_p7 = pnand %p553_p6, %p547_p3 }
  0x11   :  { %557 = shalt.err (!%p554_p7)
}
  0x12   :  { %42 = dma.hbm_to_vmem [thread:$0]  %s856_s2, 128, %s40_s18, [#allocation7]  }
  0x13   :  { %s677_s29 = smov [#allocation9]   ;;  %s678_s12 = smov [#allocation3]  }
  0x14   :  { %s64_s30 = sshll.u32 %s677_s29, 4  ;;  %s29_s13 = sshll.u32 %s678_s12, 4  ;;  %s65_s30 = int_to_ptr.vmem [resolvable:$true] %s64_s30  ;;  %s30_s13 = int_to_ptr.vmem [resolvable:$true] %s29_s13 }
  0x15   :  { %s558_s16 = scalar_lea.hbm %s860_s6, 1024 }
  0x16   :  { %p559_p8 = scmp.ne.s32.totalorder %s860_s6, %s558_s16  ;;  %p562_p9 = scmp.lt.u32.totalorder %s558_s16, %s860_s6 }
  0x18   :  { %p564_p10 = pnand %p562_p9, %p559_p8 }
  0x1a   :  { %567 = shalt.err (!%p564_p10)
}
  0x1b   :  { %s568_s2 = scalar_lea.vmem %s65_s30, 1024  ;;  %p573_p12 = scmp.lt.s32.totalorder %s65_s30, %s65_s30 }
  0x1c   :  { %p569_p11 = scmp.ne.s32.totalorder %s65_s30, %s568_s2  ;;  %p574_p13 = scmp.lt.s32.totalorder %s568_s2, %s568_s2 }
  0x1e   :  { %p575_p0 = por %p574_p13, %p573_p12 }
  0x20   :  { %p576_p1 = pnand %p575_p0, %p569_p11 }
  0x22   :  { %579 = shalt.err (!%p576_p1)
}
  0x23   :  { %s679_s18 = smov 128   ;;  %s680_s22 = smov 8  }
  0x24   :  { %70 = dma.hbm_to_vmem [thread:$0]  %s860_s6, 1024, %s65_s30, [#allocation10], %s679_s18, %s679_s18, %s680_s22  }
  0x25   :  { %s580_s27 = scalar_lea.hbm %s855_s1, 128 }
  0x26   :  { %p581_p2 = scmp.ne.s32.totalorder %s855_s1, %s580_s27  ;;  %p584_p3 = scmp.lt.u32.totalorder %s580_s27, %s855_s1 }
  0x28   :  { %p586_p4 = pnand %p584_p3, %p581_p2 }
  0x2a   :  { %589 = shalt.err (!%p586_p4)
}
  0x2b   :  { %s590_s15 = scalar_lea.vmem %s30_s13, 128  ;;  %p595_p6 = scmp.lt.s32.totalorder %s30_s13, %s30_s13 }
  0x2c   :  { %p591_p5 = scmp.ne.s32.totalorder %s30_s13, %s590_s15  ;;  %p596_p7 = scmp.lt.s32.totalorder %s590_s15, %s590_s15 }
  0x2e   :  { %p597_p8 = por %p596_p7, %p595_p6 }
  0x30   :  { %p598_p9 = pnand %p597_p8, %p591_p5 }
  0x32   :  { %601 = shalt.err (!%p598_p9)
}
  0x33   :  { %32 = dma.hbm_to_vmem [thread:$0]  %s855_s1, 128, %s30_s13, [#allocation4]  }
  0x34   :  { %s681_s16 = smov [#allocation8]   ;;  %s682_s19 = smov [#allocation11]  }
  0x35   :  { %s50_s17 = sshll.u32 %s681_s16, 4  ;;  %s78_s20 = sshll.u32 %s682_s19, 4  ;;  %s51_s17 = int_to_ptr.vmem [resolvable:$true] %s50_s17  ;;  %s79_s20 = int_to_ptr.vmem [resolvable:$true] %s78_s20 }
  0x36   :  { %s602_s23 = scalar_lea.hbm %s858_s4, 256 }
  0x37   :  { %p603_p10 = scmp.ne.s32.totalorder %s858_s4, %s602_s23  ;;  %p606_p11 = scmp.lt.u32.totalorder %s602_s23, %s858_s4 }
  0x39   :  { %p608_p12 = pnand %p606_p11, %p603_p10 }
  0x3b   :  { %611 = shalt.err (!%p608_p12)
}
  0x3c   :  { %s612_s1 = scalar_lea.vmem %s51_s17, 256  ;;  %p617_p0 = scmp.lt.s32.totalorder %s51_s17, %s51_s17 }
  0x3d   :  { %p613_p13 = scmp.ne.s32.totalorder %s51_s17, %s612_s1  ;;  %p618_p1 = scmp.lt.s32.totalorder %s612_s1, %s612_s1 }
  0x3f   :  { %p619_p2 = por %p618_p1, %p617_p0 }
  0x41   :  { %p620_p3 = pnand %p619_p2, %p613_p13 }
  0x43   :  { %623 = shalt.err (!%p620_p3)
}
  0x44   :  { %56 = dma.hbm_to_vmem [thread:$0]  %s858_s4, 256, %s51_s17, [#allocation7], %s679_s18, %s679_s18, %s680_s22  }
  0x45   :  { %s624_s14 = scalar_lea.hbm %s862_s8, 1024 }
  0x46   :  { %p625_p4 = scmp.ne.s32.totalorder %s862_s8, %s624_s14  ;;  %p628_p5 = scmp.lt.u32.totalorder %s624_s14, %s862_s8 }
  0x48   :  { %p630_p6 = pnand %p628_p5, %p625_p4 }
  0x4a   :  { %633 = shalt.err (!%p630_p6)
}
  0x4b   :  { %s634_s19 = scalar_lea.vmem %s79_s20, 1024  ;;  %p639_p8 = scmp.lt.s32.totalorder %s79_s20, %s79_s20 }
  0x4c   :  { %p635_p7 = scmp.ne.s32.totalorder %s79_s20, %s634_s19  ;;  %p640_p9 = scmp.lt.s32.totalorder %s634_s19, %s634_s19 }
  0x4e   :  { %p641_p10 = por %p640_p9, %p639_p8 }
  0x50   :  { %p642_p11 = pnand %p641_p10, %p635_p7 }
  0x52   :  { %645 = shalt.err (!%p642_p11)
}
  0x53   :  { %84 = dma.hbm_to_vmem [thread:$0]  %s862_s8, 1024, %s79_s20, [#allocation10], %s679_s18, %s679_s18, %s680_s22  }
  0x54   :  { %668 = dma.done.wait [#allocation4], 128  }
  0x55   :  { %669 = vsyncadd [#allocation4], 4294967168 }
  0x56   :  { %670 = dma.done.wait [#allocation7], 384  }
  0x57   :  { %671 = vsyncadd [#allocation7], 4294966912 }
  0x58   :  { %672 = dma.done.wait [#allocation10], 2048  }
  0x59   :  { %673 = vsyncadd [#allocation10], 4294965248  ;;  %v683_v0 = vmov 0.0|0.0   ;;  %vm684_vm0 = vmmov 0   ;;  %v685_v1 = vmov 0.0   ;;  %v105_v2 = vld [vmem:[#allocation8] sm:$0xff]  ;;  %v396_v54 = vlaneseq }
  0x5a   :  { %494 = vmatprep.subr.bf16.mxu0 %v683_v0  ;;  %453 = vmatprep.mubr.msk.f32.mxu0 %vm684_vm0, %v685_v1  ;;  %v106_v3 = vld [vmem:[#allocation8 + $0x8] sm:$0xff]  ;;  %v189_v5 = vld [vmem:[#allocation9] sm:$0xff]  ;;  %v190_v6 = vld [vmem:[#allocation9 + $0x8] sm:$0xff]  ;;  %vm114_vm1 = vcmask 130048   ;;  %vm204_vm2 = vcmask 523264   ;;  %v388_v56 = vstv %s854_s0 }
  0x5b   :  { %497 = vmatprep.subr.bf16.mxu1 %v683_v0  ;;  %472 = vmatprep.mubr.msk.f32.mxu1 %vm684_vm0, %v685_v1  ;;  %v495_v4 = vpack.c.bf16 %v106_v3, %v105_v2  ;;  %v498_v7 = vpack.c.bf16 %v190_v6, %v189_v5  ;;  %v104_v8 = vld [vmem:[#allocation3] sm:$0xff]  ;;  %v191_v9 = vld [vmem:[#allocation9 + $0x10] sm:$0xff]  ;;  %v192_v10 = vld [vmem:[#allocation9 + $0x18] sm:$0xff]  ;;  %v397_v58 = vand.u32 127, %v396_v54 }
  0x5c   :  { %v501_v11 = vpack.c.bf16 %v192_v10, %v191_v9  ;;  %v193_v12 = vld [vmem:[#allocation9 + $0x20] sm:$0xff]  ;;  %v194_v13 = vld [vmem:[#allocation9 + $0x28] sm:$0xff]  ;;  %v195_v15 = vld [vmem:[#allocation9 + $0x30] sm:$0xff] }
  0x5d   :  { %496 = vmatpush3.bf16.msra.mxu0 %v495_v4  ;;  %499 = vmatpush3.bf16.msra.mxu1 %v498_v7  ;;  %v504_v14 = vpack.c.bf16 %v194_v13, %v193_v12  ;;  %v196_v16 = vld [vmem:[#allocation9 + $0x38] sm:$0xff]  ;;  %v279_v18 = vld [vmem:[#allocation11] sm:$0xff]  ;;  %v280_v19 = vld [vmem:[#allocation11 + $0x8] sm:$0xff]  ;;  %vm398_vm3 = vcmp.eq.s32.totalorder %v397_v58, 5  ;;  %vm400_vm4 = vcmp.eq.s32.totalorder %v397_v58, 6 }
  0x5e   :  { %509 = vmatprep.subr.bf16.mxu0 %v683_v0  ;;  %500 = vmatprep.subr.bf16.mxu1 %v683_v0  ;;  %v507_v17 = vpack.c.bf16 %v196_v16, %v195_v15  ;;  %v510_v20 = vpack.c.bf16 %v280_v19, %v279_v18  ;;  %v420_v21 = vld [vmem:[%s859_s5] ss:$0 sm:$0xff]  ;;  %v281_v26 = vld [vmem:[#allocation11 + $0x10] sm:$0xff]  ;;  %v282_v27 = vld [vmem:[#allocation11 + $0x18] sm:$0xff] }
  0x5f   :  { %v513_v28 = vpack.c.bf16 %v282_v27, %v281_v26  ;;  %v283_v29 = vld [vmem:[#allocation11 + $0x20] sm:$0xff]  ;;  %v284_v30 = vld [vmem:[#allocation11 + $0x28] sm:$0xff]  ;;  %v285_v32 = vld [vmem:[#allocation11 + $0x30] sm:$0xff] }
  0x60   :  { %454 = vmatmul.mubr.msk.f32.vlgmr.msra.gmra.mrb[0].mxu0 %vm114_vm1, %v104_v8  ;;  %v516_v31 = vpack.c.bf16 %v284_v30, %v283_v29  ;;  %v286_v33 = vld [vmem:[#allocation11 + $0x38] sm:$0xff]  ;;  %v422_v35 = vld [vmem:[%s861_s7] ss:$0 sm:$0xff]  ;;  %v370_v43 = vld [vmem:[#allocation6] sm:$0xff] }
  0x61   :  { %491 = vmatprep.mubr.msk.f32.mxu0 %vm684_vm0, %v685_v1  ;;  %502 = vmatpush3.bf16.msra.mxu1 %v501_v11  ;;  %v519_v34 = vpack.c.bf16 %v286_v33, %v285_v32  ;;  %v424_v40 = vld [vmem:[%s863_s9] ss:$0 sm:$0xff]  ;;  %v427_v49 = vld [vmem:[%s864_s10 + $0x1] ss:$0 sm:$0xff] }
  0x62   :  { %503 = vmatprep.subr.bf16.mxu1 %v683_v0  ;;  %511 = vmatpush3.bf16.msra.mxu0 %v510_v20  ;;  %v426_v42 = vld [vmem:[%s864_s10] ss:$0 sm:$0xff] }
  0x63   :  { %512 = vmatprep.subr.bf16.mxu0 %v683_v0  ;;  %v377_v44 = vld [vmem:[%s857_s3] sm:$0xff]  ;;  %v375_v47 = vmul.f32 %v426_v42, %v370_v43  ;;  %s686_s3 = smov [#allocation12]  }
  0x64   :  { %s409_s10 = sshll.u32 %s686_s3, 4  ;;  %s410_s10 = int_to_ptr.vmem [resolvable:$true] %s409_s10 }
  0x65   :  { %505 = vmatpush3.bf16.msra.mxu1 %v504_v14  ;;  %v390_v51 = vmul.f32 %v375_v47, %v375_v47  ;;  %s646_s1 = scalar_lea.vmem %s410_s10, 128  ;;  %p651_p13 = scmp.lt.s32.totalorder %s410_s10, %s410_s10 }
  0x66   :  { %506 = vmatprep.subr.bf16.mxu1 %v683_v0  ;;  %514 = vmatpush3.bf16.msra.mxu0 %v513_v28  ;;  %p647_p12 = scmp.ne.s32.totalorder %s410_s10, %s646_s1  ;;  %p652_p0 = scmp.lt.s32.totalorder %s646_s1, %s646_s1 }
  0x67   :  { %515 = vmatprep.subr.bf16.mxu0 %v683_v0  ;;  %v391_v53 = vmul.f32 %v427_v49, %v390_v51 }
  0x68   :  { %p653_p1 = por %p652_p0, %p651_p13 }
  0x69   :  { %508 = vmatpush3.bf16.msra.mxu1 %v507_v17 }
  0x6a   :  { %517 = vmatpush3.bf16.msra.mxu0 %v516_v31  ;;  %p654_p2 = pnand %p653_p1, %p647_p12 }
  0x6b   :  { %518 = vmatprep.subr.bf16.mxu0 %v683_v0 }
  0x6e   :  { %520 = vmatpush3.bf16.msra.mxu0 %v519_v34 }
 0x133   :  { %v184_v22 = vpop.f32.mrb[0].mxu0 }
 0x134   :  { %v185_v23 = vadd.f32 %v420_v21, %v184_v22  ;;  %v455_v24 = vpop.f32.mrb[1].mxu0 }
 0x136   :  { %532 = vtanh.f32 %v185_v23 }
 0x140   :  { %v533_v25 = vpop.eup %532 }
 0x141   :  { %473 = vmatmul.mubr.msk.f32.vlgmr.msra.gmra.mrb[0].mxu1 %vm204_vm2, %v533_v25 }
 0x214   :  { %v274_v36 = vpop.f32.mrb[0].mxu1 }
 0x215   :  { %v275_v37 = vadd.f32 %v422_v35, %v274_v36  ;;  %v474_v38 = vpop.f32.mrb[1].mxu1 }
 0x217   :  { %534 = vtanh.f32 %v275_v37 }
 0x221   :  { %v535_v39 = vpop.eup %534 }
 0x222   :  { %492 = vmatmul.mubr.msk.f32.vlgmr.msra.gmra.mrb[2].mxu0 %vm204_vm2, %v535_v39 }
 0x2f5   :  { %v363_v41 = vpop.f32.mrb[2].mxu0 }
 0x2f6   :  { %v364_v45 = vadd.f32 %v424_v40, %v363_v41  ;;  %v493_v46 = vpop.f32.mrb[3].mxu0 }
 0x2f8   :  { %v378_v48 = vsub.f32 %v377_v44, %v364_v45  ;;  %v376_v62 = vadd.f32 %v375_v47, %v364_v45 }
 0x2fa   :  { %v379_v50 = vmul.f32 %v378_v48, %v378_v48 }
 0x2fc   :  { %v384_v52 = vmul.f32 %v427_v49, %v379_v50 }
 0x2fe   :  { %385 = vadd.xlane.f32.xlu0 %v384_v52 }
 0x302   :  { %392 = vadd.xlane.f32.xlu0 %v391_v53 }
 0x38b   :  { %v386_v55 = vpop.xlane.xlu0 %385 }
 0x38c   :  { %v387_v57 = vmul.f32 -0.5, %v386_v55 }
 0x38e   :  { %v389_v59 = vadd.f32 %v388_v56, %v387_v57 }
 0x38f   :  { %v393_v60 = vpop.xlane.xlu0 %392 }
 0x390   :  { %v394_v61 = vmul.f32 -0.5, %v393_v60  ;;  %v399_v0 = vsel %vm398_vm3, %v389_v59, %v376_v62 }
 0x392   :  { %v395_v63 = vadd.f32 %v394_v61, %v388_v56 }
 0x394   :  { %v401_v1 = vsel %vm400_vm4, %v395_v63, %v399_v0 }
 0x395   :  { %402 = vst [vmem:[#allocation12] sm:$0xff] %v401_v1 }
 0x396   :  { %657 = shalt.err (!%p654_p2)
}
 0x397   :  { %s658_s28 = scalar_lea.hbm %s865_s11, 128 }
 0x398   :  { %p659_p3 = scmp.ne.s32.totalorder %s865_s11, %s658_s28  ;;  %p662_p4 = scmp.lt.u32.totalorder %s658_s28, %s865_s11 }
 0x39a   :  { %p664_p5 = pnand %p662_p4, %p659_p3 }
 0x39c   :  { %667 = shalt.err (!%p664_p5)
}
 0x39d   :  { %412 = dma.vmem_to_hbm [thread:$0]  %s410_s10, 128, %s865_s11, [#allocation5]  }
 0x39e   :  { %674 = dma.done.wait [#allocation5], 128  }
 0x39f   :  { %675 = vsyncadd [#allocation5], 4294967168 }
 0x3a0   :  { %416 = vsyncpa [#allocation4], 1 }
 0x3a1   :  { %417 = vsyncpa [#allocation7], 1 }
 0x3a2   :  { %418 = vsyncpa [#allocation10], 1 }
 0x3a3   :  { %419 = vsyncpa [#allocation5], 1 }

</bundles_post_ra>
